<compile_context>
chip_gen: v5e
topology: v5e:2x2
jax: 0.10.0
libtpu: 0.0.40
codegen_flags: <defaults>
</compile_context>

<pallas_src>
import functools

import jax
import jax.numpy as jnp
from jax.experimental import pallas as pl
from jax.experimental.pallas import tpu as pltpu


def _adapter_kernel(x_ref, w1_ref, w2_ref, o_ref, *, residual_scale):
    """One batch tile: relu(relu(x@w1) @ w2_scaled) + residual_scale * x."""
    x = x_ref[...]                                                       # (TB, F)
    h = jnp.dot(x, w1_ref[...], preferred_element_type=jnp.float32)     # (TB, H), f32 acc
    h = jnp.maximum(h, 0.0)                                              # ReLU
    out = jnp.dot(h.astype(w2_ref.dtype), w2_ref[...],
                  preferred_element_type=jnp.float32)                    # (TB, F), f32 acc
    out = jnp.maximum(out, 0.0)                                          # ReLU (ratio folded into w2)
    y = out + residual_scale * x.astype(jnp.float32)                     # blend in f32
    o_ref[...] = y.astype(o_ref.dtype)


def prepare_adapter_weights(w1, w2, ratio):
    """ONE-TIME weight preprocessing (do not call per forward).

    Folds `ratio` into W2: for ratio >= 0, ratio * relu(z) == relu(ratio * z),
    so the scale rides the MXU for free and the kernel skips one VPU multiply.
    Expects weights already in (in_features, out_features) layout.
    """
    assert ratio >= 0.0, "ratio must be non-negative to fold into W2"
    return w1, w2 * jnp.asarray(ratio, w2.dtype)


def clip_adapter(x, w1, w2_scaled, *, ratio=0.2, block_batch=256, compute_dtype=None):
    """CLIPAdapter forward.

    x:         (B, F) activations.
    w1:        (F, H) first Linear weight, pre-transposed (H = F // reduction).
    w2_scaled: (H, F) second Linear weight, pre-transposed and pre-scaled by `ratio`
               (see prepare_adapter_weights).
    ratio:     residual mixing ratio (only (1-ratio) is used in-kernel).
    block_batch: batch tile size. Sized so (x tile + out tile) * 2 buffers + both weights
               stay well under the 32 MiB default scoped VMEM (portable to v7x's 64 MiB
               physical VMEM). E.g. TB=256..512 for F~512-1024 f32/bf16.
    compute_dtype: e.g. jnp.bfloat16 on v6e/v7x to halve memory traffic and feed the
               bf16 MXU; accumulation/blend remain f32, output keeps x.dtype.
    """
    B, F = x.shape
    Fw, H = w1.shape
    assert Fw == F and w2_scaled.shape == (H, F)
    out_dtype = x.dtype

    if compute_dtype is not None:
        x_in = x.astype(compute_dtype)
        w1 = w1.astype(compute_dtype)
        w2_scaled = w2_scaled.astype(compute_dtype)
    else:
        x_in = x

    # Pick a batch tile: full batch if it fits in one tile, otherwise a multiple of 8
    # (sublane-aligned). Pad batch so every grid step sees a full tile.
    tb = min(block_batch, B)
    if tb < B:
        tb = max(8, (tb // 8) * 8)
    b_pad = pl.cdiv(B, tb) * tb
    if b_pad != B:
        x_in = jnp.pad(x_in, ((0, b_pad - B), (0, 0)))

    grid = (b_pad // tb,)

    itemsize = jnp.dtype(x_in.dtype).itemsize
    cost = pl.CostEstimate(
        flops=4 * b_pad * F * H,  # two matmuls: 2*B*F*H each
        transcendentals=0,
        bytes_accessed=(b_pad * F * itemsize            # x
                        + F * H * itemsize              # w1
                        + H * F * itemsize              # w2
                        + b_pad * F * jnp.dtype(out_dtype).itemsize),  # out
    )

    kernel = functools.partial(_adapter_kernel, residual_scale=float(1.0 - ratio))

    out = pl.pallas_call(
        kernel,
        out_shape=jax.ShapeDtypeStruct((b_pad, F), out_dtype),
        grid=grid,
        in_specs=[
            pl.BlockSpec((tb, F), lambda i: (i, 0)),     # x: tiled over batch
            pl.BlockSpec((F, H), lambda i: (0, 0)),      # w1: resident across steps
            pl.BlockSpec((H, F), lambda i: (0, 0)),      # w2: resident across steps
        ],
        out_specs=pl.BlockSpec((tb, F), lambda i: (i, 0)),
        compiler_params=pltpu.CompilerParams(
            dimension_semantics=("parallel",),           # lets v7x shard batch tiles across 2 TCs
        ),
        cost_estimate=cost,
    )(x_in, w1, w2_scaled)

    if b_pad != B:
        out = out[:B]
    return out


def clip_adapter_ref(x, w1, w2, *, ratio=0.2):
    """Pure-JAX reference matching the PyTorch module (unscaled w2)."""
    h = jnp.maximum(x @ w1, 0.0)
    out = jnp.maximum(h @ w2, 0.0)
    return ratio * out + (1.0 - ratio) * x


if __name__ == "__main__":
    feat_dim = 32
    reduction = 2
    ratio = 0.2
    batch = 16

    key = jax.random.PRNGKey(0)
    kx, k1, k2 = jax.random.split(key, 3)

    x = jax.random.normal(kx, (batch, feat_dim), dtype=jnp.float32)
    # PyTorch Linear weight is (out, in); we store the transpose (in, out) so the
    # kernel does x @ W.
    w1 = jax.random.normal(k1, (feat_dim, feat_dim // reduction), dtype=jnp.float32) * 0.1
    w2 = jax.random.normal(k2, (feat_dim // reduction, feat_dim), dtype=jnp.float32) * 0.1

    # One-time weight prep: fold ratio into w2.
    w1_p, w2_p = prepare_adapter_weights(w1, w2, ratio)

    y_ref = clip_adapter_ref(x, w1, w2, ratio=ratio)

    # f32 path (tight correctness check). block_batch=8 exercises the batch grid (2 steps).
    y = clip_adapter(x, w1_p, w2_p, ratio=ratio, block_batch=8)
    jax.block_until_ready(y)
    assert jnp.allclose(y, y_ref, atol=1e-5, rtol=1e-5), "f32 kernel mismatch vs reference"

    # bf16 operand path (v6e/v7x MXU-friendly), f32 accumulation — looser tolerance.
    y_bf16 = clip_adapter(x, w1_p, w2_p, ratio=ratio, block_batch=8,
                          compute_dtype=jnp.bfloat16)
    jax.block_until_ready(y_bf16)
    assert jnp.allclose(y_bf16, y_ref, atol=5e-2, rtol=5e-2), "bf16 kernel mismatch vs reference"

    print("KERNEL_OK")
</pallas_src>

<mosaic_0001>
module attributes {stable_mosaic.version = 11 : i64} {
  func.func @_adapter_kernel(%arg0: i32, %arg1: memref<8x32xf32, #tpu.memory_space<vmem>>, %arg2: memref<32x16xf32, #tpu.memory_space<vmem>>, %arg3: memref<16x32xf32, #tpu.memory_space<vmem>>, %arg4: memref<8x32xf32, #tpu.memory_space<vmem>>) attributes {dimension_semantics = [#tpu.dimension_semantics<parallel>], iteration_bounds = array<i64: 2>, scalar_prefetch = 0 : i64, scratch_operands = 0 : i64, tpu.core_type = #tpu.core_type<tc>, window_params = [{transform_indices = @transform_0, window_bounds = array<i64: 8, 32>}, {pipeline_mode = #tpu.pipeline_mode<synchronous>, transform_indices = @transform_1, window_bounds = array<i64: 32, 16>}, {pipeline_mode = #tpu.pipeline_mode<synchronous>, transform_indices = @transform_2, window_bounds = array<i64: 16, 32>}, {transform_indices = @transform_3, window_bounds = array<i64: 8, 32>}]} {
    %c0 = arith.constant 0 : index
    %c0_0 = arith.constant 0 : index
    %0 = vector.load %arg1[%c0, %c0_0] : memref<8x32xf32, #tpu.memory_space<vmem>>, vector<8x32xf32>
    %c0_1 = arith.constant 0 : index
    %c0_2 = arith.constant 0 : index
    %1 = vector.load %arg2[%c0_1, %c0_2] : memref<32x16xf32, #tpu.memory_space<vmem>>, vector<32x16xf32>
    %cst = arith.constant dense<0.000000e+00> : vector<8x16xf32>
    %2 = tpu.matmul %0, %1, %cst {dimension_numbers = #tpu.dot_dimension_numbers<[1], [0], [0], [1], [0, 0, 1, 1], [], []>} : vector<8x32xf32>, vector<32x16xf32>, vector<8x16xf32> -> vector<8x16xf32>
    %cst_3 = arith.constant 0.000000e+00 : f32
    %3 = vector.broadcast %cst_3 : f32 to vector<8x16xf32>
    %4 = arith.maximumf %2, %3 : vector<8x16xf32>
    %c0_4 = arith.constant 0 : index
    %c0_5 = arith.constant 0 : index
    %5 = vector.load %arg3[%c0_4, %c0_5] : memref<16x32xf32, #tpu.memory_space<vmem>>, vector<16x32xf32>
    %cst_6 = arith.constant dense<0.000000e+00> : vector<8x32xf32>
    %6 = tpu.matmul %4, %5, %cst_6 {dimension_numbers = #tpu.dot_dimension_numbers<[1], [0], [0], [1], [0, 0, 1, 1], [], []>} : vector<8x16xf32>, vector<16x32xf32>, vector<8x32xf32> -> vector<8x32xf32>
    %cst_7 = arith.constant 0.000000e+00 : f32
    %7 = vector.broadcast %cst_7 : f32 to vector<8x32xf32>
    %8 = arith.maximumf %6, %7 : vector<8x32xf32>
    %cst_8 = arith.constant 8.000000e-01 : f32
    %9 = vector.broadcast %cst_8 : f32 to vector<8x32xf32>
    %10 = arith.mulf %9, %0 : vector<8x32xf32>
    %11 = arith.addf %8, %10 : vector<8x32xf32>
    %c0_9 = arith.constant 0 : index
    %c0_10 = arith.constant 0 : index
    %12 = vector.load %arg4[%c0_9, %c0_10] : memref<8x32xf32, #tpu.memory_space<vmem>>, vector<8x32xf32>
    tpu.vector_store %arg4[%c0_9, %c0_10], %11 {strides = array<i32>} : memref<8x32xf32, #tpu.memory_space<vmem>>, vector<8x32xf32>,
    return
  }
  func.func @transform_0(%arg0: i32) -> (i32, i32) {
    %c0_i32 = arith.constant 0 : i32
    %c0_i32_0 = arith.constant 0 : i32
    return %arg0, %c0_i32 : i32, i32
  }
  func.func @transform_1(%arg0: i32) -> (i32, i32) {
    %c0_i32 = arith.constant 0 : i32
    %c0_i32_0 = arith.constant 0 : i32
    %c0_i32_1 = arith.constant 0 : i32
    return %c0_i32, %c0_i32_0 : i32, i32
  }
  func.func @transform_2(%arg0: i32) -> (i32, i32) {
    %c0_i32 = arith.constant 0 : i32
    %c0_i32_0 = arith.constant 0 : i32
    %c0_i32_1 = arith.constant 0 : i32
    return %c0_i32, %c0_i32_0 : i32, i32
  }
  func.func @transform_3(%arg0: i32) -> (i32, i32) {
    %c0_i32 = arith.constant 0 : i32
    %c0_i32_0 = arith.constant 0 : i32
    return %arg0, %c0_i32 : i32, i32
  }
}

</mosaic_0001>

<bundles_post_ra>
// kernel: tpu_custom_call.1
= control target key start
LH: loop header
LB: loop body
LE: loop exit
PB: predicated region body
PF: predicated region fallthrough
CT: control target
= control target key end

     0   :  { %8 = vsyncpa [#allocation3], 0  ;;  %s541_s0 = inlined_call_operand.vmem [shape: f32[16,32], index: 0, kind: input, shape index: {}]   ;;  %s542_s1 = inlined_call_operand.vmem [shape: f32[32,16], index: 1, kind: input, shape index: {}]   ;;  %s543_s2 = inlined_call_operand.vmem [shape: f32[16,32], index: 2, kind: input, shape index: {}]   ;;  %s544_s3 = inlined_call_operand.hbm [shape: f32[16,32], index: 3, kind: output, shape index: {}]  }
   0x1   :  { %10 = vsyncpa [#allocation3 + $0x1], 0  ;;  %s436_s12 = smov 0   ;;  %s438_s13 = smov 0  }
   0x2   :  { %s440_s14 = smov 0   ;;  %s442_s15 = smov 0  }
   0x3 LB: > { %s457_s16 = sadd.s32 4294967295, %s414_s15   ;;  %s301_s17 = sadd.s32 4294967294, %s414_s15   ;;  %s414_s15 = sphi %s442_s15, %s550_s15   ;;  %s410_s14 = sphi %s440_s14, %s549_s14   ;;  %s406_s13 = sphi %s438_s13, %s548_s13   ;;  %s402_s12 = sphi %s436_s12, %s547_s12  }
   0x4   : > { %s461_s18 = sadd.s32 1, %s414_s15   ;;  %s91_s19 = sadd.s32 1, %s410_s14 }
   0x5   : > { %s88_s20 = ssub.s32 %s414_s15, %s461_s18  ;;  %p101_p0 = scmp.ne.s32.totalorder %s410_s14, %s406_s13 }
   0x6   : > { %p89_p1 = scmp.eq.s32.totalorder %s88_s20, 0  ;;  %p102_p2 = scmp.eq.s32.totalorder %s457_s16, 1 }
   0x7   : > { %p107_p3 = scmp.ne.s32.totalorder %s406_s13, %s402_s12  ;;  %p108_p4 = scmp.eq.s32.totalorder %s301_s17, 1 }
   0x8   : > { %s472_s21 = scalar_select %p89_p1, %s410_s14, %s91_s19  }
   0x9   : > { %p474_p5 = por %p102_p2, %p101_p0  ;;  %p478_p6 = por %p108_p4, %p107_p3 }
   0xa   : > { %p304_p7 = scmp.ge.s32.totalorder %s414_s15, 1  ;;  %p139_p8 = scmp.lt.s32.totalorder %s414_s15, 3 }
   0xc   : > { %p140_p9 = pnand %p304_p7, %p139_p8 }
   0xd   : > { %p162_p10 = scmp.lt.s32.totalorder (!%p140_p9), %s457_s16, 1  ;;  %s159_s20 = sand.u32 (!%p140_p9), 1, %s406_s13  }
   0xe   : > { %143 = sbr.rel (%p140_p9) target bundleno = 288 (0x120), region = 32  ;;  %s305_s24 = sshll.u32 (!%p140_p9), %s159_s20, 3 }
   0xf   : > { %s310_s25 = sshll.u32 (!%p140_p9), %s457_s16, 3  ;;  %s161_s29 = scalar_lea.vmem (!%p140_p9), [#allocation2], %s305_s24 }
  0x10   : > { %s237_s28 = scalar_lea.hbm (!%p140_p9), %s544_s3, %s310_s25  ;;  %s227_s5 = scalar_lea.sflag (!%p140_p9), [#allocation3], %s159_s20 }
  0x11   : > { %s241_s4 = sshll.u32 (!%p140_p9), %s237_s28, 4  ;;  %s242_s4 = int_to_ptr.hbm [resolvable:$true] %s241_s4 }
  0x13   : > { %v170_v0 = vld [vmem:[%s542_s1 + $0x18] sm:$0xff]  ;;  %v169_v1 = vld [vmem:[%s542_s1 + $0x10] sm:$0xff]  ;;  %v168_v2 = vld [vmem:[%s542_s1 + $0x8] sm:$0xff]  ;;  %s163_s30 = scalar_select %p162_p10, %s457_s16, 1  ;;  %vm171_vm0 = vcmask 261120   ;;  %vm198_vm1 = vcmask 130048  }
  0x14   : > { %187 = vmatpush.msra.mxu0 %v170_v0  ;;  %v167_v3 = vld [vmem:[%s542_s1] sm:$0xff]  ;;  %v197_v5 = vld [vmem:[%s543_s2 + $0x8] sm:$0xff] }
  0x15   : > { %s306_s6 = sshll.u32 %s163_s30, 3  ;;  %216 = vmatpush.msra.mxu1 %v197_v5  ;;  %v196_v6 = vld [vmem:[%s543_s2] sm:$0xff]  ;;  %s239_s30 = sshll.u32 %s161_s29, 4  ;;  %s240_s30 = int_to_ptr.vmem [resolvable:$true] %s239_s30 }
  0x16   : > { %188 = vmatpush.msra.mxu0 %v169_v1  ;;  %s165_s9 = scalar_lea.vmem %s541_s0, %s306_s6  ;;  %s366_s6 = sshra.s32 %s242_s4, 4  ;;  %s367_s6 = int_to_ptr.hbm [resolvable:$true] %s366_s6 }
  0x17   : > { %v166_v4 = vld [vmem:[%s165_s9] sm:$0xff]  ;;  %217 = vmatpush.msra.mxu1 %v196_v6  ;;  %s368_s16 = scalar_lea.hbm %s367_s6, 8  ;;  %s372_s9 = scalar_lea.hbm %s544_s3, 16 }
  0x18   : > { %189 = vmatpush.msra.mxu0 %v168_v2  ;;  %v223_v9 = vmul.f32 0.8, %v166_v4  ;;  %p369_p11 = scmp.ne.s32.totalorder %s367_s6, %s368_s16  ;;  %p373_p0 = scmp.lt.s32.totalorder %s367_s6, %s544_s3 }
  0x19   : > { %p374_p1 = scmp.lt.s32.totalorder %s372_s9, %s368_s16 }
  0x1a   : > { %190 = vmatpush.msra.mxu0 %v167_v3  ;;  %p370_p12 = pnand %p369_p11, %p474_p5 }
  0x1b   : > { %307 = vmatmul.msk.f32.vlgmr.msra.gmra.mxu0 %vm171_vm0, %v166_v4  ;;  %p375_p2 = por %p374_p1, %p373_p0 }
  0x1c   : > { %p371_p13 = pneg %p370_p12 }
  0x1e   : > { %p376_p3 = pnand %p375_p2, %p371_p13 }
  0x98   : > { %v192_v7 = vpop.f32.mrf.mxu0 }
  0x99   : > { %v195_v8 = vmax.f32 %v192_v7, 0.0 }
  0x9b   : > { %308 = vmatmul.msk.f32.vlgmr.msra.gmra.mxu1 %vm198_vm1, %v195_v8 }
 0x118   : > { %v219_v10 = vpop.f32.mrf.mxu1 }
 0x119   : > { %v222_v11 = vmax.f32 %v219_v10, 0.0 }
 0x11b   : > { %v224_v12 = vadd.f32 %v223_v9, %v222_v11 }
 0x11d   : > { %225 = vst.msk [vmem:[%s161_s29] sm:$0xff] %vm171_vm0, %v224_v12 }
 0x11e   : > { %379 = shalt.err (!%p376_p3)
}
 0x11f   : > { %313 = dma.vmem_to_hbm [thread:$0]  (%p474_p5), %s240_s30, 128, %s242_s4, %s227_s5  }
 0x120 PF: > { %p319_p4 = scmp.ge.s32.totalorder %s414_s15, 2  ;;  %s253_s17 = sand.u32 1, %s402_s12  }
 0x121   : > { %s254_s19 = scalar_lea.sflag [#allocation3], %s253_s17 }
 0x122   : > { %p316_p7 = pnand %p319_p4, %p478_p6 }
 0x124   : > { %p317_p8 = pneg %p316_p7 }
 0x126   : > { %397 = dma.done.wait (%p317_p8), %s254_s19, 128  }
 0x127   : > { %399 = vsyncadd (%p317_p8), %s254_s19, 4294967168  ;;  %p13_p9 = scmp.ge.s32.totalorder %s461_s18, 4   ;;  %s547_s12 = smov %s406_s13 }
 0x128   : > { %s548_s13 = smov %s410_s14  ;;  %s549_s14 = smov %s472_s21 }
 0x129   : > { %s550_s15 = smov %s461_s18  ;;  %15 = sbr.rel (!%p13_p9) target bundleno = 3 (0x3), region = 67 }
 0x12e   :  { %260 = vsyncpa [#allocation3], 1 }
 0x12f   :  { %262 = vsyncpa [#allocation3 + $0x1], 1 }

</bundles_post_ra>
